<compile_context>
chip_gen: v7x
topology: tpu7x:2x2x1
jax: 0.10.0
libtpu: 0.0.40
codegen_flags: <defaults>
</compile_context>

<pallas_src>
import jax
import jax.numpy as jnp
from jax.experimental import pallas as pl
from jax.experimental.pallas import tpu as pltpu


def _mlp_kernel(x_ref, w1_ref, b1_ref, w2_ref, b2_ref, w3_ref, b3_ref, o_ref):
    # x arrives f32 straight from HBM; cast to bf16 in-kernel (near-free VPU
    # op, hidden under the input DMA) so the MXU sees bf16 operands.
    x = x_ref[...].astype(jnp.bfloat16)
    # Layer 1: Linear (bf16 MXU matmul, f32 accumulate) + bias/ReLU in f32.
    h = jnp.dot(x, w1_ref[...], preferred_element_type=jnp.float32)
    h = jnp.maximum(h + b1_ref[...], 0.0)
    # Layer 2: Linear + ReLU.
    h = jnp.dot(h.astype(jnp.bfloat16), w2_ref[...],
                preferred_element_type=jnp.float32)
    h = jnp.maximum(h + b2_ref[...], 0.0)
    # Layer 3 (output layer): Linear, no activation.
    o = jnp.dot(h.astype(jnp.bfloat16), w3_ref[...],
                preferred_element_type=jnp.float32)
    o_ref[...] = (o + b3_ref[...]).astype(o_ref.dtype)


# Max rows per batch tile. Big tiles amortize per-step pipeline overhead and
# approach the HBM roofline; at 4096 rows the pipelined f32 x/out tiles plus
# f32 intermediates are a few MiB — under every generation's scoped-VMEM
# default (16 MiB on v5e), so no vmem_limit_bytes override is needed.
DEFAULT_MAX_TB = 4096
# Below this batch size a single grid step is cheapest everywhere (megacore
# sharding can't win back the per-step overhead on such tiny kernels).
_SINGLE_TILE_BATCH = 512


def _choose_tb(batch, max_tb):
    """Pick the batch-tile size (rows per grid step)."""
    if batch <= _SINGLE_TILE_BATCH:
        return batch  # block shape == full array shape is always legal.
    # Moderately large batch: tb = round_up(cdiv(batch, 2k), 8) for the
    # smallest k with tb <= max_tb -> an even, balanced number of grid steps
    # so the "parallel" batch axis shards evenly across v7x's 2 TensorCores
    # (no-op on single-core v5e/v6e). Multiple of 8 keeps (8,128) tiling legal.
    k = 1
    while True:
        tb = -(-batch // (2 * k))      # cdiv(batch, 2k)
        tb = -(-tb // 8) * 8           # round up to multiple of 8
        if tb <= max_tb:
            return tb
        k += 1


def feedforward_net(x, params, max_tb=DEFAULT_MAX_TB, out_dtype=jnp.float32):
    """params = [(W1, b1), (W2, b2), (W3, b3)], W_i: (in, out), b_i: (1, out)."""
    (w1, b1), (w2, b2), (w3, b3) = params
    batch = x.shape[0]
    in_dim = w1.shape[0]
    out_dim = w3.shape[1]

    tb = _choose_tb(batch, max_tb)
    grid = (pl.cdiv(batch, tb),)   # ragged last block handled by Pallas.

    # Weights are tiny and VMEM-resident (constant index_map -> DMA'd once),
    # so a one-time wrapper-side bf16 convert costs nothing per grid step.
    w1b, w2b, w3b = (w.astype(jnp.bfloat16) for w in (w1, w2, w3))

    resident = lambda a: pl.BlockSpec(a.shape, lambda i: (0,) * a.ndim)

    return pl.pallas_call(
        _mlp_kernel,
        out_shape=jax.ShapeDtypeStruct((batch, out_dim), out_dtype),
        grid=grid,
        in_specs=[
            pl.BlockSpec((tb, in_dim), lambda i: (i, 0)),   # x: tiled over batch
            resident(w1b), resident(b1),
            resident(w2b), resident(b2),
            resident(w3b), resident(b3),
        ],
        out_specs=pl.BlockSpec((tb, out_dim), lambda i: (i, 0)),
        compiler_params=pltpu.CompilerParams(
            dimension_semantics=("parallel",)),
    )(x, w1b, b1, w2b, b2, w3b, b3)


def init_linear(key, fan_in, fan_out):
    """Deterministic init matching nn.Linear's U(-1/sqrt(fan_in), 1/sqrt(fan_in))."""
    kw, kb = jax.random.split(key)
    bound = 1.0 / (fan_in ** 0.5)
    w = jax.random.uniform(kw, (fan_in, fan_out), jnp.float32, -bound, bound)
    b = jax.random.uniform(kb, (1, fan_out), jnp.float32, -bound, bound)
    return w, b


def reference_forward_f32(x, params):
    """Pure-f32 JAX reference matching the PyTorch module's math."""
    (w1, b1), (w2, b2), (w3, b3) = params
    h = jnp.maximum(jnp.dot(x, w1, preferred_element_type=jnp.float32) + b1, 0.0)
    h = jnp.maximum(jnp.dot(h, w2, preferred_element_type=jnp.float32) + b2, 0.0)
    return jnp.dot(h, w3, preferred_element_type=jnp.float32) + b3


def reference_forward_bf16(x, params):
    """Reference with the same bf16-operand / f32-accumulate policy as the kernel."""
    (w1, b1), (w2, b2), (w3, b3) = params
    bf = jnp.bfloat16
    h = jnp.dot(x.astype(bf), w1.astype(bf), preferred_element_type=jnp.float32)
    h = jnp.maximum(h + b1, 0.0)
    h = jnp.dot(h.astype(bf), w2.astype(bf), preferred_element_type=jnp.float32)
    h = jnp.maximum(h + b2, 0.0)
    o = jnp.dot(h.astype(bf), w3.astype(bf), preferred_element_type=jnp.float32)
    return o + b3


if __name__ == "__main__":
    # sizes_of_layers = [32, 64, 64, 16], activations = [relu, relu]
    # NOTE: bf16 MXU operands deviate from the pure-f32 PyTorch module by
    # roughly 1e-2 relative error; both an f32 reference (bf16-aware tolerance)
    # and a bf16-matched reference are checked below.
    # TODO(synk): dropout path (USE_DROPOUT=True) not implemented — module default is off.
    sizes = [32, 64, 64, 16]

    key = jax.random.PRNGKey(0)
    kx, k1, k2, k3 = jax.random.split(key, 4)
    params = [
        init_linear(k1, sizes[0], sizes[1]),
        init_linear(k2, sizes[1], sizes[2]),
        init_linear(k3, sizes[2], sizes[3]),
    ]

    # Small case: single tile, trivial grid.
    batch = 8
    x = jax.random.normal(kx, (batch, sizes[0]), jnp.float32)
    out = jax.block_until_ready(feedforward_net(x, params))
    assert out.shape == (batch, sizes[-1])
    assert out.dtype == jnp.float32
    assert jnp.allclose(out, reference_forward_bf16(x, params), atol=1e-3, rtol=1e-3)
    assert jnp.allclose(out, reference_forward_f32(x, params), atol=5e-2, rtol=5e-2)

    # Larger, non-multiple batch: exercises the 2-step balanced grid and the
    # ragged last block (no wrapper-side padding or output slicing).
    batch2 = 1030
    x2 = jax.random.normal(kx, (batch2, sizes[0]), jnp.float32)
    out2 = jax.block_until_ready(feedforward_net(x2, params))
    assert out2.shape == (batch2, sizes[-1])
    assert jnp.allclose(out2, reference_forward_bf16(x2, params), atol=1e-3, rtol=1e-3)
    assert jnp.allclose(out2, reference_forward_f32(x2, params), atol=5e-2, rtol=5e-2)

    print("KERNEL_OK")
</pallas_src>

<mosaic_0001>
module attributes {stable_mosaic.version = 11 : i64} {
  func.func @_mlp_kernel(%arg0: i32, %arg1: memref<8x32xf32, #tpu.memory_space<vmem>>, %arg2: memref<32x64xbf16, #tpu.memory_space<vmem>>, %arg3: memref<1x64xf32, #tpu.memory_space<vmem>>, %arg4: memref<64x64xbf16, #tpu.memory_space<vmem>>, %arg5: memref<1x64xf32, #tpu.memory_space<vmem>>, %arg6: memref<64x16xbf16, #tpu.memory_space<vmem>>, %arg7: memref<1x16xf32, #tpu.memory_space<vmem>>, %arg8: memref<8x16xf32, #tpu.memory_space<vmem>>) attributes {dimension_semantics = [#tpu.dimension_semantics<parallel>], iteration_bounds = array<i64: 1>, scalar_prefetch = 0 : i64, scratch_operands = 0 : i64, tpu.core_type = #tpu.core_type<tc>, window_params = [{transform_indices = @transform_0, window_bounds = array<i64: 8, 32>}, {pipeline_mode = #tpu.pipeline_mode<synchronous>, transform_indices = @transform_1, window_bounds = array<i64: 32, 64>}, {pipeline_mode = #tpu.pipeline_mode<synchronous>, transform_indices = @transform_2, window_bounds = array<i64: 1, 64>}, {pipeline_mode = #tpu.pipeline_mode<synchronous>, transform_indices = @transform_3, window_bounds = array<i64: 64, 64>}, {pipeline_mode = #tpu.pipeline_mode<synchronous>, transform_indices = @transform_4, window_bounds = array<i64: 1, 64>}, {pipeline_mode = #tpu.pipeline_mode<synchronous>, transform_indices = @transform_5, window_bounds = array<i64: 64, 16>}, {pipeline_mode = #tpu.pipeline_mode<synchronous>, transform_indices = @transform_6, window_bounds = array<i64: 1, 16>}, {transform_indices = @transform_7, window_bounds = array<i64: 8, 16>}]} {
    %c0 = arith.constant 0 : index
    %c0_0 = arith.constant 0 : index
    %0 = vector.load %arg1[%c0, %c0_0] : memref<8x32xf32, #tpu.memory_space<vmem>>, vector<8x32xf32>
    %1 = arith.truncf %0 : vector<8x32xf32> to vector<8x32xbf16>
    %c0_1 = arith.constant 0 : index
    %c0_2 = arith.constant 0 : index
    %2 = vector.load %arg2[%c0_1, %c0_2] : memref<32x64xbf16, #tpu.memory_space<vmem>>, vector<32x64xbf16>
    %cst = arith.constant dense<0.000000e+00> : vector<8x64xf32>
    %3 = tpu.matmul %1, %2, %cst {dimension_numbers = #tpu.dot_dimension_numbers<[1], [0], [0], [1], [0, 0, 1, 1], [], []>} : vector<8x32xbf16>, vector<32x64xbf16>, vector<8x64xf32> -> vector<8x64xf32>
    %c0_3 = arith.constant 0 : index
    %c0_4 = arith.constant 0 : index
    %4 = vector.load %arg3[%c0_3, %c0_4] : memref<1x64xf32, #tpu.memory_space<vmem>>, vector<1x64xf32>
    %5 = vector.broadcast %4 : vector<1x64xf32> to vector<8x64xf32>
    %6 = arith.addf %3, %5 : vector<8x64xf32>
    %cst_5 = arith.constant 0.000000e+00 : f32
    %7 = vector.broadcast %cst_5 : f32 to vector<8x64xf32>
    %8 = arith.maximumf %6, %7 : vector<8x64xf32>
    %9 = arith.truncf %8 : vector<8x64xf32> to vector<8x64xbf16>
    %c0_6 = arith.constant 0 : index
    %c0_7 = arith.constant 0 : index
    %10 = vector.load %arg4[%c0_6, %c0_7] : memref<64x64xbf16, #tpu.memory_space<vmem>>, vector<64x64xbf16>
    %cst_8 = arith.constant dense<0.000000e+00> : vector<8x64xf32>
    %11 = tpu.matmul %9, %10, %cst_8 {dimension_numbers = #tpu.dot_dimension_numbers<[1], [0], [0], [1], [0, 0, 1, 1], [], []>} : vector<8x64xbf16>, vector<64x64xbf16>, vector<8x64xf32> -> vector<8x64xf32>
    %c0_9 = arith.constant 0 : index
    %c0_10 = arith.constant 0 : index
    %12 = vector.load %arg5[%c0_9, %c0_10] : memref<1x64xf32, #tpu.memory_space<vmem>>, vector<1x64xf32>
    %13 = vector.broadcast %12 : vector<1x64xf32> to vector<8x64xf32>
    %14 = arith.addf %11, %13 : vector<8x64xf32>
    %cst_11 = arith.constant 0.000000e+00 : f32
    %15 = vector.broadcast %cst_11 : f32 to vector<8x64xf32>
    %16 = arith.maximumf %14, %15 : vector<8x64xf32>
    %17 = arith.truncf %16 : vector<8x64xf32> to vector<8x64xbf16>
    %c0_12 = arith.constant 0 : index
    %c0_13 = arith.constant 0 : index
    %18 = vector.load %arg6[%c0_12, %c0_13] : memref<64x16xbf16, #tpu.memory_space<vmem>>, vector<64x16xbf16>
    %cst_14 = arith.constant dense<0.000000e+00> : vector<8x16xf32>
    %19 = tpu.matmul %17, %18, %cst_14 {dimension_numbers = #tpu.dot_dimension_numbers<[1], [0], [0], [1], [0, 0, 1, 1], [], []>} : vector<8x64xbf16>, vector<64x16xbf16>, vector<8x16xf32> -> vector<8x16xf32>
    %c0_15 = arith.constant 0 : index
    %c0_16 = arith.constant 0 : index
    %20 = vector.load %arg7[%c0_15, %c0_16] : memref<1x16xf32, #tpu.memory_space<vmem>>, vector<1x16xf32>
    %21 = vector.broadcast %20 : vector<1x16xf32> to vector<8x16xf32>
    %22 = arith.addf %19, %21 : vector<8x16xf32>
    %c0_17 = arith.constant 0 : index
    %c0_18 = arith.constant 0 : index
    %23 = vector.load %arg8[%c0_17, %c0_18] : memref<8x16xf32, #tpu.memory_space<vmem>>, vector<8x16xf32>
    tpu.vector_store %arg8[%c0_17, %c0_18], %22 {strides = array<i32>} : memref<8x16xf32, #tpu.memory_space<vmem>>, vector<8x16xf32>,
    return
  }
  func.func @transform_0(%arg0: i32) -> (i32, i32) {
    %c0_i32 = arith.constant 0 : i32
    %c0_i32_0 = arith.constant 0 : i32
    return %arg0, %c0_i32 : i32, i32
  }
  func.func @transform_1(%arg0: i32) -> (i32, i32) {
    %c0_i32 = arith.constant 0 : i32
    %c0_i32_0 = arith.constant 0 : i32
    %c0_i32_1 = arith.constant 0 : i32
    return %c0_i32, %c0_i32_0 : i32, i32
  }
  func.func @transform_2(%arg0: i32) -> (i32, i32) {
    %c0_i32 = arith.constant 0 : i32
    %c0_i32_0 = arith.constant 0 : i32
    %c0_i32_1 = arith.constant 0 : i32
    return %c0_i32, %c0_i32_0 : i32, i32
  }
  func.func @transform_3(%arg0: i32) -> (i32, i32) {
    %c0_i32 = arith.constant 0 : i32
    %c0_i32_0 = arith.constant 0 : i32
    %c0_i32_1 = arith.constant 0 : i32
    return %c0_i32, %c0_i32_0 : i32, i32
  }
  func.func @transform_4(%arg0: i32) -> (i32, i32) {
    %c0_i32 = arith.constant 0 : i32
    %c0_i32_0 = arith.constant 0 : i32
    %c0_i32_1 = arith.constant 0 : i32
    return %c0_i32, %c0_i32_0 : i32, i32
  }
  func.func @transform_5(%arg0: i32) -> (i32, i32) {
    %c0_i32 = arith.constant 0 : i32
    %c0_i32_0 = arith.constant 0 : i32
    %c0_i32_1 = arith.constant 0 : i32
    return %c0_i32, %c0_i32_0 : i32, i32
  }
  func.func @transform_6(%arg0: i32) -> (i32, i32) {
    %c0_i32 = arith.constant 0 : i32
    %c0_i32_0 = arith.constant 0 : i32
    %c0_i32_1 = arith.constant 0 : i32
    return %c0_i32, %c0_i32_0 : i32, i32
  }
  func.func @transform_7(%arg0: i32) -> (i32, i32) {
    %c0_i32 = arith.constant 0 : i32
    %c0_i32_0 = arith.constant 0 : i32
    return %arg0, %c0_i32 : i32, i32
  }
}

</mosaic_0001>

<bundles_post_ra>
// kernel: tpu_custom_call.1
= control target key start
LH: loop header
LB: loop body
LE: loop exit
PB: predicated region body
PF: predicated region fallthrough
CT: control target
= control target key end

     0   :  { %12 = vsyncpa [#allocation3], 0  ;;  %s530_s0 = inlined_call_operand.hbm [shape: f32[8,32], index: 0, kind: input, shape index: {}]   ;;  %s531_s1 = inlined_call_operand.vmem [shape: bf16[32,64], index: 1, kind: input, shape index: {}]   ;;  %s532_s2 = inlined_call_operand.vmem [shape: f32[1,64], index: 2, kind: input, shape index: {}]   ;;  %s533_s3 = inlined_call_operand.vmem [shape: bf16[64,64], index: 3, kind: input, shape index: {}]   ;;  %s534_s4 = inlined_call_operand.vmem [shape: f32[1,64], index: 4, kind: input, shape index: {}]   ;;  %s535_s5 = inlined_call_operand.vmem [shape: bf16[64,16], index: 5, kind: input, shape index: {}]   ;;  %s536_s6 = inlined_call_operand.vmem [shape: f32[1,16], index: 6, kind: input, shape index: {}]   ;;  %s537_s7 = inlined_call_operand.hbm [shape: f32[8,16], index: 7, kind: output, shape index: {}]  }
   0x1   :  { %13 = vsyncpa [#allocation4], 0  ;;  %s418_s24 = smov [#allocation2]   ;;  %s370_s28 = scalar_lea.hbm %s530_s0, 128 }
   0x2   :  { %s20_s25 = sshll.u32 %s418_s24, 4  ;;  %p371_p0 = scmp.ne.s32.totalorder %s530_s0, %s370_s28  ;;  %s21_s25 = int_to_ptr.vmem [resolvable:$true] %s20_s25 }
   0x3   :  { %p374_p1 = scmp.lt.u32.totalorder %s370_s28, %s530_s0 }
   0x5   :  { %p376_p2 = pnand %p374_p1, %p371_p0 }
   0x7   :  { %379 = shalt.err (!%p376_p2)
}
   0x8   :  { %s380_s10 = scalar_lea.vmem %s21_s25, 128  ;;  %p385_p4 = scmp.lt.s32.totalorder %s21_s25, %s21_s25 }
   0x9   :  { %p381_p3 = scmp.ne.s32.totalorder %s21_s25, %s380_s10  ;;  %p386_p5 = scmp.lt.s32.totalorder %s380_s10, %s380_s10 }
   0xb   :  { %p387_p6 = por %p386_p5, %p385_p4 }
   0xd   :  { %p388_p7 = pnand %p387_p6, %p381_p3 }
   0xf   :  { %391 = shalt.err (!%p388_p7)
}
  0x10   :  { %23 = dma.hbm_to_vmem [thread:$0]  %s530_s0, 128, %s21_s25, [#allocation3]  }
  0x11   :  { %414 = dma.done.wait [#allocation3], 128  }
  0x12   :  { %415 = vsyncadd [#allocation3], 4294967168  ;;  %v419_v0 = vmov 0.0   ;;  %vm420_vm0 = vmmov 0   ;;  %v360_v1 = vld [vmem:[%s531_s1] sm:$0xff]   ;;  %v361_v2 = vld [vmem:[%s531_s1 + $0x8] sm:$0xff]  }
  0x13   :  { %324 = vmatprep.subr.bf16.mxu0 %v419_v0  ;;  %328 = vmatprep.mubr.msk.bf16.mxu0 %vm420_vm0, %v419_v0  ;;  %v40_v3 = vld [vmem:[#allocation2] sm:$0xff]  ;;  %vm65_vm1 = vcmask 261120   ;;  %v363_v5 = vld [vmem:[%s533_s3 + $0x8] sm:$0xff]   ;;  %v364_v7 = vld [vmem:[%s533_s3 + $0x10] sm:$0xff]   ;;  %vm150_vm2 = vcmask 523264   ;;  %s421_s12 = smov [#allocation5]  }
  0x14   :  { %332 = vmatprep.subr.bf16.mxu1 %v419_v0  ;;  %340 = vmatprep.mubr.msk.bf16.mxu1 %vm420_vm0, %v419_v0  ;;  %v362_v4 = vld [vmem:[%s533_s3] sm:$0xff]   ;;  %v41_v6 = vpack.c.bf16 %v40_v3, %v40_v3  ;;  %v365_v8 = vld [vmem:[%s533_s3 + $0x18] sm:$0xff]   ;;  %v367_v10 = vld [vmem:[%s535_s5 + $0x8] sm:$0xff]   ;;  %vm278_vm3 = vcmask 130048  }
  0x15   :  { %325 = vmatpush3.bf16.msra.mxu0 %v360_v1  ;;  %333 = vmatpush3.bf16.msra.mxu1 %v362_v4  ;;  %v366_v9 = vld [vmem:[%s535_s5] sm:$0xff]   ;;  %v368_v19 = vld [vmem:[%s535_s5 + $0x10] sm:$0xff]   ;;  %v369_v20 = vld [vmem:[%s535_s5 + $0x18] sm:$0xff]   ;;  %s286_s5 = sshll.u32 %s421_s12, 4  ;;  %s287_s5 = int_to_ptr.vmem [resolvable:$true] %s286_s5 }
  0x16   :  { %326 = vmatprep.subr.bf16.mxu0 %v419_v0  ;;  %334 = vmatprep.subr.bf16.mxu1 %v419_v0  ;;  %v295_v11 = vld [vmem:[%s532_s2] ss:$0 sm:$0xff]  ;;  %p397_p9 = scmp.lt.s32.totalorder %s287_s5, %s287_s5 }
  0x17   :  { %v299_v21 = vld [vmem:[%s534_s4] ss:$0 sm:$0xff]  ;;  %s392_s4 = scalar_lea.vmem %s287_s5, 128 }
  0x18   :  { %v305_v29 = vld [vmem:[%s536_s6] ss:$0 sm:$0xff]  ;;  %p393_p8 = scmp.ne.s32.totalorder %s287_s5, %s392_s4  ;;  %p398_p10 = scmp.lt.s32.totalorder %s392_s4, %s392_s4 }
  0x19   :  { %327 = vmatpush3.bf16.msra.mxu0 %v361_v2  ;;  %335 = vmatpush3.bf16.msra.mxu1 %v363_v5 }
  0x1a   :  { %344 = vmatprep.subr.bf16.mxu0 %v419_v0  ;;  %336 = vmatprep.subr.bf16.mxu1 %v419_v0  ;;  %p399_p11 = por %p398_p10, %p397_p9 }
  0x1c   :  { %329 = vmatmul.mubr.msk.bf16.vlgmr.msra.gmra.mrb[0].mxu0 %vm65_vm1, %v41_v6  ;;  %p400_p12 = pnand %p399_p11, %p393_p8 }
  0x1d   :  { %352 = vmatprep.mubr.msk.bf16.mxu0 %vm420_vm0, %v419_v0  ;;  %337 = vmatpush3.bf16.msra.mxu1 %v364_v7 }
  0x1e   :  { %338 = vmatprep.subr.bf16.mxu1 %v419_v0  ;;  %345 = vmatpush3.bf16.msra.mxu0 %v366_v9 }
  0x1f   :  { %346 = vmatprep.subr.bf16.mxu0 %v419_v0 }
  0x21   :  { %339 = vmatpush3.bf16.msra.mxu1 %v365_v8 }
  0x22   :  { %347 = vmatpush3.bf16.msra.mxu0 %v367_v10 }
  0x23   :  { %348 = vmatprep.subr.bf16.mxu0 %v419_v0 }
  0x26   :  { %349 = vmatpush3.bf16.msra.mxu0 %v368_v19 }
  0x27   :  { %350 = vmatprep.subr.bf16.mxu0 %v419_v0 }
  0x2a   :  { %351 = vmatpush3.bf16.msra.mxu0 %v369_v20 }
  0xef   :  { %v103_v12 = vpop.f32.mrb[0].mxu0 }
  0xf0   :  { %v104_v13 = vadd.f32 %v295_v11, %v103_v12  ;;  %v330_v14 = vpop.f32.mrb[1].mxu0 }
  0xf1   :  { %v106_v15 = vpop.f32.mrb[2].mxu0 }
  0xf2   :  { %v109_v16 = vmax.f32 %v104_v13, 0.0  ;;  %v331_v17 = vpop.f32.mrb[3].mxu0 }
  0xf4   :  { %v110_v18 = vpack.c.bf16 %v109_v16, %v109_v16 }
  0xf6   :  { %341 = vmatmul.mubr.msk.bf16.vlgmr.msra.gmra.mrb[0].mxu1 %vm150_vm2, %v110_v18 }
 0x1c9   :  { %v188_v22 = vpop.f32.mrb[0].mxu1 }
 0x1ca   :  { %v189_v23 = vadd.f32 %v299_v21, %v188_v22  ;;  %v342_v24 = vpop.f32.mrb[1].mxu1 }
 0x1cb   :  { %v191_v25 = vpop.f32.mrb[2].mxu1 }
 0x1cc   :  { %v194_v26 = vmax.f32 %v189_v23, 0.0  ;;  %v343_v27 = vpop.f32.mrb[3].mxu1 }
 0x1ce   :  { %v195_v28 = vpack.c.bf16 %v194_v26, %v194_v26 }
 0x1d0   :  { %353 = vmatmul.mubr.msk.bf16.vlgmr.msra.gmra.mrb[4].mxu0 %vm150_vm2, %v195_v28 }
 0x2a3   :  { %v272_v30 = vpop.f32.mrb[4].mxu0 }
 0x2a4   :  { %v273_v31 = vadd.f32 %v305_v29, %v272_v30  ;;  %v354_v32 = vpop.f32.mrb[5].mxu0 }
 0x2a5   :  { %v275_v33 = vpop.f32.mrb[6].mxu0 }
 0x2a6   :  { %v355_v34 = vpop.f32.mrb[7].mxu0  ;;  %279 = vst.msk [vmem:[#allocation5] sm:$0xff] %vm278_vm3, %v273_v31 }
 0x2a7   :  { %403 = shalt.err (!%p400_p12)
}
 0x2a8   :  { %s404_s6 = scalar_lea.hbm %s537_s7, 128 }
 0x2a9   :  { %p405_p13 = scmp.ne.s32.totalorder %s537_s7, %s404_s6  ;;  %p408_p0 = scmp.lt.u32.totalorder %s404_s6, %s537_s7 }
 0x2ab   :  { %p410_p1 = pnand %p408_p0, %p405_p13 }
 0x2ad   :  { %413 = shalt.err (!%p410_p1)
}
 0x2ae   :  { %289 = dma.vmem_to_hbm [thread:$0]  %s287_s5, 128, %s537_s7, [#allocation4]  }
 0x2af   :  { %416 = dma.done.wait [#allocation4], 128  }
 0x2b0   :  { %417 = vsyncadd [#allocation4], 4294967168 }
 0x2b1   :  { %293 = vsyncpa [#allocation3], 1 }
 0x2b2   :  { %294 = vsyncpa [#allocation4], 1 }

</bundles_post_ra>
